<compile_context>
chip_gen: v5e
topology: v5e:2x2
jax: 0.10.0
libtpu: 0.0.40
codegen_flags: <defaults>
</compile_context>

<pallas_src>
import functools

import jax
import jax.numpy as jnp
from jax.experimental import pallas as pl
from jax.experimental.pallas import tpu as pltpu

_SUBLANE = 8
_LANE = 128
_MAX_TILE_LANES = 8192  # (8, 8192) f32 tile = 256 KiB; tiny even double-buffered.


def _round_up(x, m):
    return ((x + m - 1) // m) * m


def _logreg_kernel(x_ref, w_ref, b_ref, o_ref):
    # x_ref: (1, bt)   w_ref: (Cp, 1)   b_ref: (Cp, 1)   o_ref: (Cp, bt)
    # K == 1 -> linear layer is a broadcast multiply-add (pure VPU work):
    #   z[c, b] = w[c] * x[b] + bias[c]
    z = w_ref[...] * x_ref[...] + b_ref[...]            # (Cp, bt) f32
    # Exact sigmoid via tanh: one EUP push per vreg, no approx-recip error.
    o_ref[...] = (0.5 * (jnp.tanh(0.5 * z) + 1.0)).astype(o_ref.dtype)


def prepare_params(weight, bias):
    """One-time parameter prep (hoisted out of the per-call hot path).

    weight: (num_classes, 1)  -- PyTorch nn.Linear layout
    bias:   (num_classes,)
    Returns sublane-padded (Cp, 1) columns for the kernel (Cp = ceil8(C)).
    """
    c = weight.shape[0]
    cp = _round_up(c, _SUBLANE)
    w_col = jnp.zeros((cp, 1), jnp.float32).at[:c, 0].set(
        weight[:, 0].astype(jnp.float32))
    b_col = jnp.zeros((cp, 1), jnp.float32).at[:c, 0].set(
        bias.astype(jnp.float32))
    return w_col, b_col


@functools.partial(jax.jit, static_argnames=("num_classes",))
def logistic_regression_forward(x, w_col, b_col, *, num_classes):
    """sigmoid(x @ weight.T + bias) for input_size == 1.

    x:     (B, 1) float-ish
    w_col: (Cp, 1) pre-padded weight column from prepare_params
    b_col: (Cp, 1) pre-padded bias column from prepare_params
    returns (B, num_classes) float32
    """
    B, K = x.shape
    assert K == 1, "module spec fixes input_size == 1"
    Cp = w_col.shape[0]

    # --- Batch (lane) tiling -------------------------------------------------
    Bp = _round_up(B, _LANE)
    num_tiles = max(1, pl.cdiv(Bp, _MAX_TILE_LANES))
    if num_tiles == 1 and Bp >= 2 * _LANE:
        # >= 2 parallel grid steps so v7x's 2 TensorCores can split the batch.
        num_tiles = 2
    bt = _round_up(pl.cdiv(Bp, num_tiles), _LANE)
    Bp = bt * num_tiles  # padding per tile stays < 128 lanes

    # x as a lane-dense (1, Bp) row (for K == 1 this is a reshape, not a copy).
    x_row = x.astype(jnp.float32).reshape(1, B)
    if Bp != B:
        x_row = jnp.zeros((1, Bp), jnp.float32).at[:, :B].set(x_row)

    out_pad = pl.pallas_call(
        _logreg_kernel,
        out_shape=jax.ShapeDtypeStruct((Cp, Bp), jnp.float32),
        grid=(num_tiles,),
        in_specs=[
            pl.BlockSpec((1, bt), lambda i: (0, i)),    # x lane tile
            pl.BlockSpec((Cp, 1), lambda i: (0, 0)),    # weight column (resident)
            pl.BlockSpec((Cp, 1), lambda i: (0, 0)),    # bias column (resident)
        ],
        out_specs=pl.BlockSpec((Cp, bt), lambda i: (0, i)),
        compiler_params=pltpu.CompilerParams(
            dimension_semantics=("parallel",)),
    )(x_row, w_col, b_col)

    # Tiny (C, B) -> (B, C) transpose + slice, once, outside the kernel.
    return out_pad[:num_classes, :B].T


if __name__ == "__main__":
    input_size = 1
    num_classes = 3
    batch = 8

    key = jax.random.PRNGKey(0)
    kx, kw, kb = jax.random.split(key, 3)

    # Deterministic init mimicking nn.Linear default:
    # U(-1/sqrt(in_features), 1/sqrt(in_features))
    bound = 1.0 / (input_size ** 0.5)
    weight = jax.random.uniform(kw, (num_classes, input_size), jnp.float32,
                                minval=-bound, maxval=bound)
    bias = jax.random.uniform(kb, (num_classes,), jnp.float32,
                              minval=-bound, maxval=bound)
    x = jax.random.normal(kx, (batch, input_size), jnp.float32)

    # Parameter prep done once, outside the per-call path.
    w_col, b_col = prepare_params(weight, bias)

    out = logistic_regression_forward(x, w_col, b_col, num_classes=num_classes)
    out = jax.block_until_ready(out)

    # Reference in plain JAX (exact sigmoid; kernel uses the exact tanh form).
    ref = 1.0 / (1.0 + jnp.exp(-(x @ weight.T + bias)))
    assert out.shape == (batch, num_classes)
    assert jnp.allclose(out, ref, atol=1e-5, rtol=1e-5), (out, ref)

    print("KERNEL_OK")
</pallas_src>

<mosaic_0001>
module attributes {stable_mosaic.version = 11 : i64} {
  func.func @_logreg_kernel(%arg0: i32, %arg1: memref<1x128xf32, #tpu.memory_space<vmem>>, %arg2: memref<8x1xf32, #tpu.memory_space<vmem>>, %arg3: memref<8x1xf32, #tpu.memory_space<vmem>>, %arg4: memref<8x128xf32, #tpu.memory_space<vmem>>) attributes {dimension_semantics = [#tpu.dimension_semantics<parallel>], iteration_bounds = array<i64: 1>, scalar_prefetch = 0 : i64, scratch_operands = 0 : i64, tpu.core_type = #tpu.core_type<tc>, window_params = [{transform_indices = @transform_0, window_bounds = array<i64: 1, 128>}, {pipeline_mode = #tpu.pipeline_mode<synchronous>, transform_indices = @transform_1, window_bounds = array<i64: 8, 1>}, {pipeline_mode = #tpu.pipeline_mode<synchronous>, transform_indices = @transform_2, window_bounds = array<i64: 8, 1>}, {transform_indices = @transform_3, window_bounds = array<i64: 8, 128>}]} {
    %c0 = arith.constant 0 : index
    %c0_0 = arith.constant 0 : index
    %0 = vector.load %arg2[%c0, %c0_0] : memref<8x1xf32, #tpu.memory_space<vmem>>, vector<8x1xf32>
    %c0_1 = arith.constant 0 : index
    %c0_2 = arith.constant 0 : index
    %1 = vector.load %arg1[%c0_1, %c0_2] : memref<1x128xf32, #tpu.memory_space<vmem>>, vector<1x128xf32>
    %2 = vector.broadcast %0 : vector<8x1xf32> to vector<8x128xf32>
    %3 = vector.broadcast %1 : vector<1x128xf32> to vector<8x128xf32>
    %4 = arith.mulf %2, %3 : vector<8x128xf32>
    %c0_3 = arith.constant 0 : index
    %c0_4 = arith.constant 0 : index
    %5 = vector.load %arg3[%c0_3, %c0_4] : memref<8x1xf32, #tpu.memory_space<vmem>>, vector<8x1xf32>
    %6 = vector.broadcast %5 : vector<8x1xf32> to vector<8x128xf32>
    %7 = arith.addf %4, %6 : vector<8x128xf32>
    %cst = arith.constant 5.000000e-01 : f32
    %8 = vector.broadcast %cst : f32 to vector<8x128xf32>
    %9 = arith.mulf %8, %7 : vector<8x128xf32>
    %10 = math.tanh %9 : vector<8x128xf32>
    %cst_5 = arith.constant 1.000000e+00 : f32
    %11 = vector.broadcast %cst_5 : f32 to vector<8x128xf32>
    %12 = arith.addf %10, %11 : vector<8x128xf32>
    %cst_6 = arith.constant 5.000000e-01 : f32
    %13 = vector.broadcast %cst_6 : f32 to vector<8x128xf32>
    %14 = arith.mulf %13, %12 : vector<8x128xf32>
    %c0_7 = arith.constant 0 : index
    %c0_8 = arith.constant 0 : index
    %15 = vector.load %arg4[%c0_7, %c0_8] : memref<8x128xf32, #tpu.memory_space<vmem>>, vector<8x128xf32>
    tpu.vector_store %arg4[%c0_7, %c0_8], %14 {strides = array<i32>} : memref<8x128xf32, #tpu.memory_space<vmem>>, vector<8x128xf32>,
    return
  }
  func.func @transform_0(%arg0: i32) -> (i32, i32) {
    %c0_i32 = arith.constant 0 : i32
    %c0_i32_0 = arith.constant 0 : i32
    return %c0_i32, %arg0 : i32, i32
  }
  func.func @transform_1(%arg0: i32) -> (i32, i32) {
    %c0_i32 = arith.constant 0 : i32
    %c0_i32_0 = arith.constant 0 : i32
    %c0_i32_1 = arith.constant 0 : i32
    return %c0_i32, %c0_i32_0 : i32, i32
  }
  func.func @transform_2(%arg0: i32) -> (i32, i32) {
    %c0_i32 = arith.constant 0 : i32
    %c0_i32_0 = arith.constant 0 : i32
    %c0_i32_1 = arith.constant 0 : i32
    return %c0_i32, %c0_i32_0 : i32, i32
  }
  func.func @transform_3(%arg0: i32) -> (i32, i32) {
    %c0_i32 = arith.constant 0 : i32
    %c0_i32_0 = arith.constant 0 : i32
    return %c0_i32, %arg0 : i32, i32
  }
}

</mosaic_0001>

<bundles_post_ra>
// kernel: logistic_regression_forward.1
= control target key start
LH: loop header
LB: loop body
LE: loop exit
PB: predicated region body
PF: predicated region fallthrough
CT: control target
= control target key end

     0   :  { %v46_v0 = vmov 0   ;;  %s79_s1 = inlined_call_operand.vmem [shape: f32[8,1], index: 1, kind: input, shape index: {}]   ;;  %s80_s0 = inlined_call_operand.vmem [shape: f32[1,128], index: 0, kind: input, shape index: {}]   ;;  %s81_s2 = inlined_call_operand.vmem [shape: f32[8,1], index: 2, kind: input, shape index: {}]   ;;  %s82_s3 = inlined_call_operand.vmem [shape: f32[8,128], index: 3, kind: output, shape index: {}]  }
   0x1   :  { %42 = vset.pattern.permute.xlu0 %v46_v0  ;;  %v14_v1 = vld [vmem:[%s79_s1] sm:$0xff] }
   0x2   :  { %18 = vperm.xlu0 %42, %v14_v1   ;;  %v25_v2 = vld [vmem:[%s81_s2] sm:$0xff] }
   0x3   :  { %v43_v4 = vld [vmem:[%s80_s0] ss:$0 sm:$0xff] }
   0xa   :  { %28 = vperm.xlu0 %42, %v25_v2  }
  0x74   :  { %v19_v3 = vpop.permute.xlu0 %18 }
  0x75   :  { %v24_v5 = vmul.f32 %v43_v4, %v19_v3 }
  0x7c   :  { %v29_v6 = vpop.permute.xlu0 %28 }
  0x7d   :  { %v31_v7 = vadd.f32 %v29_v6, %v24_v5 }
  0x7f   :  { %v32_v8 = vmul.f32 0.5, %v31_v7 }
  0x81   :  { %44 = vtanh.f32 %v32_v8 }
  0x87   :  { %v45_v9 = vpop.eup %44 }
  0x88   :  { %v34_v10 = vadd.f32 1.0, %v45_v9 }
  0x8a   :  { %v35_v11 = vmul.f32 0.5, %v34_v10 }
  0x8c   :  { %36 = vst [vmem:[%s82_s3] sm:$0xff] %v35_v11 }

</bundles_post_ra>
